<compile_context>
chip_gen: v5e
topology: v5e:2x2
jax: 0.10.0
libtpu: 0.0.40
codegen_flags: <defaults>
</compile_context>

<pallas_src>
import functools

import jax
import jax.numpy as jnp
from jax.experimental import pallas as pl
from jax.experimental.pallas import tpu as pltpu


def make_positional_encoding_table(dim, max_len=5000, dtype=jnp.float32):
    """PE buffer from PositionalEncoding.__init__, shape (max_len, dim).

    Matches the given module source exactly:
        div_term[j] = 1 / 10000 ** (2*j / dim),  j = 0..dim-1   (length dim)
        pe[p, j]    = p * div_term[j]
        pe[:, 0::2] = sin(...);  pe[:, 1::2] = cos(...)
    (The PyTorch buffer also carries a singleton batch axis; it is added back as
    a free reshape inside the kernel wrapper when needed.)

    Build it once in the embedding dtype so the forward wrapper never has to
    slice or cast it per call.
    """
    pos = jnp.arange(0, max_len, dtype=jnp.float32)[:, None]                  # (max_len, 1)
    div_term = 1.0 / jnp.power(
        10000.0, jnp.arange(0, dim * 2, 2, dtype=jnp.float32) / float(dim))   # (dim,)
    angles = pos * div_term[None, :]                                          # (max_len, dim)
    even = (jnp.arange(dim)[None, :] % 2) == 0
    pe = jnp.where(even, jnp.sin(angles), jnp.cos(angles))
    return pe.astype(dtype)


# ---------------------------------------------------------------------------
# Kernels
# ---------------------------------------------------------------------------

def _pe_add_kernel_slab(emb_ref, pe_ref, out_ref, *, batch, dim):
    # 2D folded layout, used only when dim % 128 == 0.
    # emb_ref/out_ref: (seq_tile, batch*dim); pe_ref: (seq_tile, dim).
    # Each batch slab starts on a lane boundary -> unmasked full-slab stores,
    # no lane rotates; the pe vregs are reused for every slab.
    pe = pe_ref[...]
    for b in range(batch):
        sl = slice(b * dim, (b + 1) * dim)
        out_ref[:, sl] = emb_ref[:, sl] + pe


def _pe_add_kernel_bcast(emb_ref, pe_ref, out_ref):
    # 3D layout, used when dim is not lane-aligned.
    # emb_ref/out_ref: (seq_tile, batch, dim); pe_ref: (seq_tile, 1, dim).
    # pe is broadcast over the batch (sublane) axis; a single full-tile
    # add + store (no per-slab masked stores).
    out_ref[...] = emb_ref[...] + pe_ref[...]


# ---------------------------------------------------------------------------
# Tiling heuristics
# ---------------------------------------------------------------------------

def _sublane_multiple(dtype):
    # Rows per packed vreg: 8 for f32, 16 for bf16, 32 for int8/fp8.
    return max(8, 32 // jnp.dtype(dtype).itemsize)


def _choose_seq_tile(S, row_bytes, sublane, *, target_block_bytes=2 << 20, min_steps=8):
    """Rows per block: ~target_block_bytes per emb block, >= min_steps balanced steps.

    A mem-bound add already reaches ~85% of the HBM roofline at 1-4 MiB tiles, so
    there is no benefit to giant VMEM-filling tiles; many small, roughly equal
    steps hide the DMA head/tail and keep both v7x TensorCores busy.
    """
    cap_rows = max(sublane, (target_block_bytes // row_bytes) // sublane * sublane)
    # Enough steps for pipelining / megacore balance, but don't shred tiny inputs.
    steps = max(min(min_steps, S // sublane), pl.cdiv(S, cap_rows))
    steps = max(steps, 1)
    if steps > 1 and steps % 2:
        steps += 1                       # even, roughly equal tiles for the 2 v7x TCs
    rows = -(-S // steps)                # ceil
    rows = ((rows + sublane - 1) // sublane) * sublane
    return min(rows, S)                  # rows == S (full dim) or a sublane multiple < S


# ---------------------------------------------------------------------------
# Forward wrapper
# ---------------------------------------------------------------------------

def positional_encoding_forward(emb, pe_table, *, seq_tile=None):
    """emb: (S, B, D); pe_table: (max_len, D), ideally already in emb.dtype.

    Returns emb + pe[:S] broadcast over batch.  nn.Dropout is identity in eval
    mode (dropout not applied here).
    """
    S, B, D = emb.shape
    max_len = pe_table.shape[0]
    if S > max_len:
        raise ValueError(f"seq_len {S} exceeds positional table max_len {max_len}")

    # Fast path expects the table pre-built with exactly D columns in emb.dtype
    # (as make_positional_encoding_table does); otherwise a one-time slice/cast
    # fallback (extra HBM round trip -- avoid in steady state).
    if pe_table.shape[1] != D or pe_table.dtype != emb.dtype:
        pe_table = pe_table[:, :D].astype(emb.dtype)

    itemsize = jnp.dtype(emb.dtype).itemsize
    sublane = _sublane_multiple(emb.dtype)

    if S < sublane:
        seq_tile = S                     # degenerate: single full-extent block
    elif seq_tile is None:
        seq_tile = _choose_seq_tile(S, B * D * itemsize, sublane)
    else:
        seq_tile = min(int(seq_tile), S)
        if seq_tile < S:                 # interior tiles must be sublane multiples
            seq_tile = max(sublane, seq_tile // sublane * sublane)

    grid = (pl.cdiv(S, seq_tile),)       # partial last tile handled by Pallas

    lane_aligned = (D % 128 == 0)
    if lane_aligned:
        # Lane-dense 2D view: fold (batch, dim) into the trailing lane axis
        # (free reshape); per-batch slabs land on lane boundaries.
        emb_op = emb.reshape(S, B * D)
        if seq_tile % 8 == 0:
            pe_op = pe_table             # full table; BlockSpec selects the rows
        else:
            # seq_tile == S with ragged S: make the pe block's leading dim equal
            # its array's leading dim (rare tiny-S path; small one-time copy).
            pe_op = pe_table[:S]
        in_specs = [
            pl.BlockSpec((seq_tile, B * D), lambda i: (i, 0)),
            pl.BlockSpec((seq_tile, D), lambda i: (i, 0)),
        ]
        out_specs = pl.BlockSpec((seq_tile, B * D), lambda i: (i, 0))
        out_shape = jax.ShapeDtypeStruct((S, B * D), emb.dtype)
        kernel = functools.partial(_pe_add_kernel_slab, batch=B, dim=D)
    else:
        # 3D blocks: broadcast pe over the batch (sublane) axis inside the
        # kernel -- one full-tile add + store instead of B masked slab stores.
        emb_op = emb
        pe_op = pe_table.reshape(pe_table.shape[0], 1, D)   # free; mirrors pe.unsqueeze(1)
        in_specs = [
            pl.BlockSpec((seq_tile, B, D), lambda i: (i, 0, 0)),
            pl.BlockSpec((seq_tile, 1, D), lambda i: (i, 0, 0)),
        ]
        out_specs = pl.BlockSpec((seq_tile, B, D), lambda i: (i, 0, 0))
        out_shape = jax.ShapeDtypeStruct((S, B, D), emb.dtype)
        kernel = _pe_add_kernel_bcast

    # Default scoped VMEM (16 MiB v5e / 32 MiB v6e, v7x) comfortably fits the
    # double-buffered ~2 MiB blocks; only raise it when even a minimal
    # sublane-tall tile is too wide (extremely large B*D rows).
    block_bytes = seq_tile * itemsize * (2 * B * D + D)      # emb-in + out + pe per step
    vmem_limit = None
    if 2 * block_bytes > (12 << 20):
        vmem_limit = min(2 * block_bytes + (4 << 20), 96 << 20)

    # NOTE: pipeline_mode=pl.Buffered(3) on the emb in_spec is a marginal
    # (few-%) sweep item once tiles are small; default double-buffering is used.
    out = pl.pallas_call(
        kernel,
        out_shape=out_shape,
        grid_spec=pltpu.PrefetchScalarGridSpec(
            num_scalar_prefetch=0,
            grid=grid,
            in_specs=in_specs,
            out_specs=out_specs,
        ),
        compiler_params=pltpu.CompilerParams(
            dimension_semantics=("parallel",),
            vmem_limit_bytes=vmem_limit,
        ),
        # Output has identical shape/dtype as the embedding input: let XLA reuse
        # the buffer when the caller donates emb (no extra HBM allocation).
        input_output_aliases={0: 0},
    )(emb_op, pe_op)

    return out.reshape(S, B, D)


if __name__ == "__main__":
    # Small shapes consistent with the module: (seq_len=8, batch=2, dim=32).
    seq_len, batch, dim = 8, 2, 32
    dropout_p = 0.1  # module hyperparameter; nn.Dropout is identity in eval mode.

    key = jax.random.PRNGKey(0)
    emb = jax.random.normal(key, (seq_len, batch, dim), dtype=jnp.float32)

    # Built once, already in the embedding dtype (no per-call slice/cast needed).
    pe_table = make_positional_encoding_table(dim, max_len=5000, dtype=emb.dtype)

    # Pure-JAX reference for the forward semantics.
    ref = emb + pe_table[:seq_len, None, :dim]

    out = positional_encoding_forward(emb, pe_table)
    out = jax.block_until_ready(out)

    assert out.shape == emb.shape and out.dtype == emb.dtype
    assert jnp.allclose(out, ref, atol=1e-6, rtol=1e-6)

    print("KERNEL_OK")
</pallas_src>

<mosaic_0001>
module attributes {stable_mosaic.version = 11 : i64} {
  func.func @_pe_add_kernel_bcast(%arg0: i32, %arg1: memref<8x2x32xf32, #tpu.memory_space<vmem>>, %arg2: memref<8x1x32xf32, #tpu.memory_space<vmem>>, %arg3: memref<8x2x32xf32, #tpu.memory_space<vmem>>) attributes {dimension_semantics = [#tpu.dimension_semantics<parallel>], iteration_bounds = array<i64: 1>, scalar_prefetch = 0 : i64, scratch_operands = 0 : i64, tpu.core_type = #tpu.core_type<tc>, window_params = [{transform_indices = @transform_0, window_bounds = array<i64: 8, 2, 32>}, {transform_indices = @transform_1, window_bounds = array<i64: 8, 1, 32>}, {transform_indices = @transform_2, window_bounds = array<i64: 8, 2, 32>}]} {
    %c0 = arith.constant 0 : index
    %c0_0 = arith.constant 0 : index
    %c0_1 = arith.constant 0 : index
    %0 = vector.load %arg1[%c0, %c0_0, %c0_1] : memref<8x2x32xf32, #tpu.memory_space<vmem>>, vector<8x2x32xf32>
    %c0_2 = arith.constant 0 : index
    %c0_3 = arith.constant 0 : index
    %c0_4 = arith.constant 0 : index
    %1 = vector.load %arg2[%c0_2, %c0_3, %c0_4] : memref<8x1x32xf32, #tpu.memory_space<vmem>>, vector<8x1x32xf32>
    %2 = vector.broadcast %1 : vector<8x1x32xf32> to vector<8x2x32xf32>
    %3 = arith.addf %0, %2 : vector<8x2x32xf32>
    %c0_5 = arith.constant 0 : index
    %c0_6 = arith.constant 0 : index
    %c0_7 = arith.constant 0 : index
    %4 = vector.load %arg3[%c0_5, %c0_6, %c0_7] : memref<8x2x32xf32, #tpu.memory_space<vmem>>, vector<8x2x32xf32>
    tpu.vector_store %arg3[%c0_5, %c0_6, %c0_7], %3 {strides = array<i32>} : memref<8x2x32xf32, #tpu.memory_space<vmem>>, vector<8x2x32xf32>,
    return
  }
  func.func @transform_0(%arg0: i32) -> (i32, i32, i32) {
    %c0_i32 = arith.constant 0 : i32
    %c0_i32_0 = arith.constant 0 : i32
    %c0_i32_1 = arith.constant 0 : i32
    return %arg0, %c0_i32, %c0_i32_0 : i32, i32, i32
  }
  func.func @transform_1(%arg0: i32) -> (i32, i32, i32) {
    %c0_i32 = arith.constant 0 : i32
    %c0_i32_0 = arith.constant 0 : i32
    %c0_i32_1 = arith.constant 0 : i32
    return %arg0, %c0_i32, %c0_i32_0 : i32, i32, i32
  }
  func.func @transform_2(%arg0: i32) -> (i32, i32, i32) {
    %c0_i32 = arith.constant 0 : i32
    %c0_i32_0 = arith.constant 0 : i32
    %c0_i32_1 = arith.constant 0 : i32
    return %arg0, %c0_i32, %c0_i32_0 : i32, i32, i32
  }
}

</mosaic_0001>

<bundles_post_ra>
// kernel: tpu_custom_call.1
= control target key start
LH: loop header
LB: loop body
LE: loop exit
PB: predicated region body
PF: predicated region fallthrough
CT: control target
= control target key end

     0   :  { %7 = vsyncpa [#allocation3], 0  ;;  %s238_s0 = inlined_call_operand.hbm [shape: f32[8,2,32], index: 0, kind: input, shape index: {}, may-alias: {0,2}]   ;;  %s239_s1 = inlined_call_operand.vmem [shape: f32[5000,1,32], index: 1, kind: input, shape index: {}]   ;;  %s240_s2 = inlined_call_operand.hbm [shape: f32[8,2,32], index: 2, kind: output, shape index: {}, may-alias: {0,2}]  }
   0x1   :  { %8 = vsyncpa [#allocation4], 0  ;;  %s13_s11 = sshll.u32 %s238_s0, 4  ;;  %s168_s12 = smov [#allocation2]   ;;  %s14_s11 = int_to_ptr.hbm [resolvable:$true] %s13_s11 }
   0x2   :  { %s15_s13 = sshll.u32 %s168_s12, 4  ;;  %s169_s14 = smov 32   ;;  %s16_s13 = int_to_ptr.vmem [resolvable:$true] %s15_s13 }
   0x3   :  { %s170_s15 = smov 2  }
   0x4   :  { %21 = dma.hbm_to_vmem [thread:$0]  %s14_s11, 256, %s16_s13, [#allocation3], %s169_s14, %s169_s14, %s170_s15  }
   0x5   :  { %164 = dma.done.wait [#allocation3], 256  }
   0x6   :  { %165 = vsyncadd [#allocation3], 4294967040  ;;  %vm76_vm0 = vcmask 254976   ;;  %s171_s16 = smov [#allocation5]   ;;  %s91_s0 = sshll.u32 %s240_s2, 4  ;;  %s92_s0 = int_to_ptr.hbm [resolvable:$true] %s91_s0 }
   0x7   :  { %s193_s17 = sshll.u32 %s171_s16, 4  ;;  %v28_v0 = vld [vmem:[#allocation2] sm:$0x3]  ;;  %v29_v2 = vld [vmem:[#allocation2 + $0x2] sm:$0x3]  ;;  %s90_s17 = int_to_ptr.vmem [resolvable:$true] %s193_s17 }
   0x8   :  { %v108_v1 = vld [vmem:[%s239_s1] ss:$0 sm:$0xff]  ;;  %v109_v3 = vld [vmem:[%s239_s1 + $0x1] ss:$0 sm:$0xff]  ;;  %v30_v5 = vld [vmem:[#allocation2 + $0x4] sm:$0x3] }
   0x9   :  { %v68_v4 = vadd.f32 %v108_v1, %v28_v0  ;;  %v110_v6 = vld [vmem:[%s239_s1 + $0x2] ss:$0 sm:$0xff]  ;;  %v69_v7 = vadd.f32 %v109_v3, %v29_v2  ;;  %v31_v8 = vld [vmem:[#allocation2 + $0x6] sm:$0x3]  ;;  %v111_v9 = vld [vmem:[%s239_s1 + $0x3] ss:$0 sm:$0xff] }
   0xa   :  { %v70_v10 = vadd.f32 %v110_v6, %v30_v5  ;;  %v32_v11 = vld [vmem:[#allocation2 + $0x8] sm:$0x3]  ;;  %v71_v12 = vadd.f32 %v111_v9, %v31_v8  ;;  %v112_v13 = vld [vmem:[%s239_s1 + $0x4] ss:$0 sm:$0xff]  ;;  %v33_v14 = vld [vmem:[#allocation2 + $0xa] sm:$0x3] }
   0xb   :  { %77 = vst.msk [vmem:[#allocation5] sm:$0x3] %vm76_vm0, %v68_v4  ;;  %v113_v15 = vld [vmem:[%s239_s1 + $0x5] ss:$0 sm:$0xff]  ;;  %v72_v16 = vadd.f32 %v112_v13, %v32_v11  ;;  %v34_v17 = vld [vmem:[#allocation2 + $0xc] sm:$0x3] }
   0xc   :  { %78 = vst.msk [vmem:[#allocation5 + $0x2] sm:$0x3] %vm76_vm0, %v69_v7  ;;  %v73_v18 = vadd.f32 %v113_v15, %v33_v14  ;;  %v114_v19 = vld [vmem:[%s239_s1 + $0x6] ss:$0 sm:$0xff]  ;;  %v35_v20 = vld [vmem:[#allocation2 + $0xe] sm:$0x3] }
   0xd   :  { %79 = vst.msk [vmem:[#allocation5 + $0x4] sm:$0x3] %vm76_vm0, %v70_v10  ;;  %v115_v21 = vld [vmem:[%s239_s1 + $0x7] ss:$0 sm:$0xff]  ;;  %v74_v22 = vadd.f32 %v114_v19, %v34_v17 }
   0xe   :  { %80 = vst.msk [vmem:[#allocation5 + $0x6] sm:$0x3] %vm76_vm0, %v71_v12  ;;  %v75_v23 = vadd.f32 %v115_v21, %v35_v20 }
   0xf   :  { %81 = vst.msk [vmem:[#allocation5 + $0x8] sm:$0x3] %vm76_vm0, %v72_v16 }
  0x10   :  { %82 = vst.msk [vmem:[#allocation5 + $0xa] sm:$0x3] %vm76_vm0, %v73_v18 }
  0x11   :  { %83 = vst.msk [vmem:[#allocation5 + $0xc] sm:$0x3] %vm76_vm0, %v74_v22 }
  0x12   :  { %84 = vst.msk [vmem:[#allocation5 + $0xe] sm:$0x3] %vm76_vm0, %v75_v23 }
  0x13   :  { %97 = dma.vmem_to_hbm [thread:$0]  %s90_s17, 256, %s92_s0, [#allocation4], %s169_s14, %s169_s14, %s170_s15  }
  0x14   :  { %166 = dma.done.wait [#allocation4], 256  }
  0x15   :  { %167 = vsyncadd [#allocation4], 4294967040 }
  0x16   :  { %102 = vsyncpa [#allocation3], 1 }
  0x17   :  { %103 = vsyncpa [#allocation4], 1 }

</bundles_post_ra>
